<compile_context>
chip_gen: v5e
topology: v5e:2x2
jax: 0.10.0
libtpu: 0.0.40
codegen_flags: <defaults>
</compile_context>

<pallas_src>
import jax
import jax.numpy as jnp
from jax.experimental import pallas as pl
from jax.experimental.pallas import tpu as pltpu

EMBEDDING_DIM = 128
HIDDEN_DIM = 256

DEP_VOCAB = 288 + 1      # 289, null id = 288
SID_VOCAB = 256 + 1      # 257, null id = 256
EID_VOCAB = 256 + 1      # 257, null id = 256

SID_OFF = DEP_VOCAB                            # 289
EID_OFF = DEP_VOCAB + SID_VOCAB                # 546
V_TOTAL = DEP_VOCAB + SID_VOCAB + EID_VOCAB    # 803
V_PAD = ((V_TOTAL + 127) // 128) * 128         # 896 (lane-aligned one-hot K)

DEP_NULL_G = DEP_VOCAB - 1                     # 288
SID_NULL_G = SID_OFF + SID_VOCAB - 1           # 545
EID_NULL_G = EID_OFF + EID_VOCAB - 1           # 802


def _round_up(x, m):
    return ((x + m - 1) // m) * m


def _wide_and_deep_kernel(attr_ref, drop_ref,
                          wide_w8_ref, tab_hi_ref, tab_lo_ref,
                          b1_ref, w2_ref, b_out_ref,
                          out_ref):
    TB = attr_ref.shape[0]
    V = tab_hi_ref.shape[0]

    attr = attr_ref[...]                       # (TB, 8) float32
    drop = drop_ref[...]                       # (TB, 1) float32 in {0, 1}
    keep = 1.0 - drop

    # ---- wide path -------------------------------------------------------
    # wide_w8 has zero rows at the id columns (0, 6, 7), so attr @ wide_w8
    # equals cont @ wide_w.  Dropped rows contribute only the (fused) bias.
    wide = jnp.dot(attr * keep, wide_w8_ref[...],
                   preferred_element_type=jnp.float32)

    # ---- deep path: fused embedding-lookup + fc1 via a combined one-hot ---
    dep = attr[:, 0:1].astype(jnp.int32)
    sid = attr[:, 6:7].astype(jnp.int32) + SID_OFF
    eid = attr[:, 7:8].astype(jnp.int32) + EID_OFF
    is_drop = drop > 0.5
    dep_g = jnp.where(is_drop, DEP_NULL_G, dep)
    sid_g = jnp.where(is_drop, SID_NULL_G, sid)
    eid_g = jnp.where(is_drop, EID_NULL_G, eid)

    lane = jax.lax.broadcasted_iota(jnp.int32, (TB, V), 1)
    # bf16 one-hot: exact (values 0/1), halves the intermediate vs f32 and
    # feeds the bf16 MXU passes without an extra cast.
    onehot = ((lane == dep_g) | (lane == sid_g) | (lane == eid_g)
              ).astype(jnp.bfloat16)           # (TB, V): three 1s per row

    # Two bf16 MXU passes (hi + lo residual) accumulated in f32: ~f32-accurate
    # result at bf16 matmul throughput.
    h = jnp.dot(onehot, tab_hi_ref[...], preferred_element_type=jnp.float32)
    h = h + jnp.dot(onehot, tab_lo_ref[...], preferred_element_type=jnp.float32)
    h = jnp.maximum(h + b1_ref[...], 0.0)      # +b1, ReLU
    # Small (TB,128)x(128,128) matmul kept in f32 for accuracy headroom.
    deep = jnp.dot(h, w2_ref[...], preferred_element_type=jnp.float32)

    # ---- combine (b_out = wide_b + b2, fused at preprocess time) ----------
    out_ref[...] = wide + deep + b_out_ref[...]


def init_params(key, embedding_dim=EMBEDDING_DIM, hidden_dim=HIDDEN_DIM):
    ks = jax.random.split(key, 6)

    def linear(k, fan_in, fan_out):
        kw, kb = jax.random.split(k)
        bound = 1.0 / jnp.sqrt(jnp.float32(fan_in))
        w = jax.random.uniform(kw, (fan_in, fan_out), jnp.float32, -bound, bound)
        b = jax.random.uniform(kb, (1, fan_out), jnp.float32, -bound, bound)
        return w, b

    wide_w, wide_b = linear(ks[0], 5, embedding_dim)
    w1, b1 = linear(ks[1], hidden_dim * 3, embedding_dim)
    w2, b2 = linear(ks[2], embedding_dim, embedding_dim)
    dep_tab = jax.random.normal(ks[3], (DEP_VOCAB, hidden_dim), jnp.float32)
    sid_tab = jax.random.normal(ks[4], (SID_VOCAB, hidden_dim), jnp.float32)
    eid_tab = jax.random.normal(ks[5], (EID_VOCAB, hidden_dim), jnp.float32)

    return {
        "wide_w": wide_w, "wide_b": wide_b,
        "dep_tab": dep_tab, "sid_tab": sid_tab, "eid_tab": eid_tab,
        "w1": w1, "b1": b1, "w2": w2, "b2": b2,
    }


def preprocess_params(params):
    """One-time weight preprocessing: table@W1 fusion, stacking, padding,
    bf16 hi/lo split of the fused table, bias merge."""
    H = params["dep_tab"].shape[1]
    E = params["w1"].shape[1]
    w1 = params["w1"]
    fused = jnp.concatenate([
        params["dep_tab"] @ w1[0:H, :],
        params["sid_tab"] @ w1[H:2 * H, :],
        params["eid_tab"] @ w1[2 * H:3 * H, :],
    ], axis=0)                                             # (V_TOTAL, E) f32
    fused = jnp.pad(fused, ((0, V_PAD - V_TOTAL), (0, 0)))  # padded rows never hit
    # bf16 hi/lo split: hi + lo reconstructs fused to ~16 mantissa bits.
    tab_hi = fused.astype(jnp.bfloat16)
    tab_lo = (fused - tab_hi.astype(jnp.float32)).astype(jnp.bfloat16)
    # 8-row wide weight: rows 1..5 = wide_w, id columns (0, 6, 7) are zero rows.
    wide_w8 = jnp.zeros((8, E), jnp.float32).at[1:6, :].set(params["wide_w"])
    return {
        "wide_w8": wide_w8,
        "tab_hi": tab_hi,
        "tab_lo": tab_lo,
        "b1": params["b1"],
        "w2": params["w2"],
        "b_out": params["wide_b"] + params["b2"],
    }


def wide_and_deep_pallas(pre, attr, cond_drop_prob, drop_key=None, block_b=512):
    """attr: (B, 8) float32.  Returns (B, EMBEDDING_DIM) float32."""
    B = attr.shape[0]
    E = pre["w2"].shape[1]

    if cond_drop_prob > 0:
        # classifier-free-guidance style conditional dropout (same semantics
        # as `torch.rand(B) < p`), shared with the reference via the same key.
        drop = (jax.random.uniform(drop_key, (B,)) < cond_drop_prob
                ).astype(jnp.float32)[:, None]
    else:
        drop = jnp.zeros((B, 1), jnp.float32)

    # Batch tiling: TB is a multiple of 8; force an EVEN number (>= 2) of grid
    # steps so the "parallel" batch axis shards across both v7x TensorCores.
    TB = min(block_b, max(8, _round_up(pl.cdiv(B, 2), 8)))
    steps = pl.cdiv(B, TB)
    if steps % 2:
        steps += 1
    B_pad = steps * TB
    if B_pad != B:
        # padded rows have all-zero attrs -> valid ids; results sliced off below
        attr = jnp.pad(attr, ((0, B_pad - B), (0, 0)))
        drop = jnp.pad(drop, ((0, B_pad - B), (0, 0)))

    weight_bytes = (pre["wide_w8"].size * 4 + pre["tab_hi"].size * 2 +
                    pre["tab_lo"].size * 2 + pre["b1"].size * 4 +
                    pre["w2"].size * 4 + pre["b_out"].size * 4)
    cost = pl.CostEstimate(
        flops=2 * B_pad * E * (2 * V_PAD + E + 8),
        transcendentals=0,
        bytes_accessed=B_pad * (8 + 1 + E) * 4 + weight_bytes,
    )

    out = pl.pallas_call(
        _wide_and_deep_kernel,
        out_shape=jax.ShapeDtypeStruct((B_pad, E), jnp.float32),
        grid=(steps,),
        in_specs=[
            pl.BlockSpec((TB, 8), lambda i: (i, 0)),       # attr tile
            pl.BlockSpec((TB, 1), lambda i: (i, 0)),       # drop-mask tile
            pl.BlockSpec((8, E), lambda i: (0, 0)),        # wide_w8 (resident)
            pl.BlockSpec((V_PAD, E), lambda i: (0, 0)),    # fused table hi (bf16)
            pl.BlockSpec((V_PAD, E), lambda i: (0, 0)),    # fused table lo (bf16)
            pl.BlockSpec((1, E), lambda i: (0, 0)),        # b1
            pl.BlockSpec((E, E), lambda i: (0, 0)),        # w2
            pl.BlockSpec((1, E), lambda i: (0, 0)),        # fused output bias
        ],
        out_specs=pl.BlockSpec((TB, E), lambda i: (i, 0)),
        compiler_params=pltpu.CompilerParams(
            dimension_semantics=("parallel",)),
        cost_estimate=cost,
    )(attr, drop, pre["wide_w8"], pre["tab_hi"], pre["tab_lo"], pre["b1"],
      pre["w2"], pre["b_out"])
    return out[:B]


def wide_and_deep_reference(params, attr, cond_drop_prob, drop_key=None):
    """Plain-JAX reference matching the PyTorch forward (unfused f32 weights)."""
    cont = attr[:, 1:6]
    dep = attr[:, 0].astype(jnp.int32)
    sid = attr[:, 6].astype(jnp.int32)
    eid = attr[:, 7].astype(jnp.int32)
    if cond_drop_prob > 0:
        drop = jax.random.uniform(drop_key, (attr.shape[0],)) < cond_drop_prob
        cont = jnp.where(drop[:, None], 0.0, cont)
        dep = jnp.where(drop, DEP_VOCAB - 1, dep)
        sid = jnp.where(drop, SID_VOCAB - 1, sid)
        eid = jnp.where(drop, EID_VOCAB - 1, eid)
    wide = cont @ params["wide_w"] + params["wide_b"]
    cat = jnp.concatenate([params["dep_tab"][dep],
                           params["sid_tab"][sid],
                           params["eid_tab"][eid]], axis=1)
    h = jnp.maximum(cat @ params["w1"] + params["b1"], 0.0)
    deep = h @ params["w2"] + params["b2"]
    return wide + deep


if __name__ == "__main__":
    key = jax.random.PRNGKey(0)
    pkey, akey, ikey, dkey = jax.random.split(key, 4)

    params = init_params(pkey)
    pre = preprocess_params(params)     # one-time fusion / padding / bf16 split

    B = 8
    cond_drop_prob = 0.25
    # attr layout (matches PyTorch module): col 0 = departure id, cols 1:6 =
    # 5 continuous features, col 6 = sid, col 7 = eid (ids stored as floats).
    dep_ids = jax.random.randint(ikey, (B,), 0, 288)
    sid_ids = jax.random.randint(jax.random.fold_in(ikey, 1), (B,), 0, 256)
    eid_ids = jax.random.randint(jax.random.fold_in(ikey, 2), (B,), 0, 256)
    cont = jax.random.normal(akey, (B, 5), jnp.float32)
    attr = jnp.concatenate([dep_ids[:, None].astype(jnp.float32),
                            cont,
                            sid_ids[:, None].astype(jnp.float32),
                            eid_ids[:, None].astype(jnp.float32)], axis=1)

    out = wide_and_deep_pallas(pre, attr, cond_drop_prob, drop_key=dkey)
    out = jax.block_until_ready(out)

    ref = wide_and_deep_reference(params, attr, cond_drop_prob, drop_key=dkey)
    assert out.shape == (B, EMBEDDING_DIM)
    assert jnp.allclose(out, ref, atol=2e-3, rtol=2e-3), "mismatch vs reference"

    print("KERNEL_OK")
</pallas_src>

<mosaic_0001>
module attributes {stable_mosaic.version = 11 : i64} {
  func.func @_wide_and_deep_kernel(%arg0: i32, %arg1: memref<8x8xf32, #tpu.memory_space<vmem>>, %arg2: memref<8x1xf32, #tpu.memory_space<vmem>>, %arg3: memref<8x128xf32, #tpu.memory_space<vmem>>, %arg4: memref<896x128xbf16, #tpu.memory_space<vmem>>, %arg5: memref<896x128xbf16, #tpu.memory_space<vmem>>, %arg6: memref<1x128xf32, #tpu.memory_space<vmem>>, %arg7: memref<128x128xf32, #tpu.memory_space<vmem>>, %arg8: memref<1x128xf32, #tpu.memory_space<vmem>>, %arg9: memref<8x128xf32, #tpu.memory_space<vmem>>) attributes {dimension_semantics = [#tpu.dimension_semantics<parallel>], iteration_bounds = array<i64: 2>, scalar_prefetch = 0 : i64, scratch_operands = 0 : i64, tpu.core_type = #tpu.core_type<tc>, window_params = [{transform_indices = @transform_0, window_bounds = array<i64: 8, 8>}, {transform_indices = @transform_1, window_bounds = array<i64: 8, 1>}, {pipeline_mode = #tpu.pipeline_mode<synchronous>, transform_indices = @transform_2, window_bounds = array<i64: 8, 128>}, {pipeline_mode = #tpu.pipeline_mode<synchronous>, transform_indices = @transform_3, window_bounds = array<i64: 896, 128>}, {pipeline_mode = #tpu.pipeline_mode<synchronous>, transform_indices = @transform_4, window_bounds = array<i64: 896, 128>}, {pipeline_mode = #tpu.pipeline_mode<synchronous>, transform_indices = @transform_5, window_bounds = array<i64: 1, 128>}, {pipeline_mode = #tpu.pipeline_mode<synchronous>, transform_indices = @transform_6, window_bounds = array<i64: 128, 128>}, {pipeline_mode = #tpu.pipeline_mode<synchronous>, transform_indices = @transform_7, window_bounds = array<i64: 1, 128>}, {transform_indices = @transform_8, window_bounds = array<i64: 8, 128>}]} {
    %c0 = arith.constant 0 : index
    %c0_0 = arith.constant 0 : index
    %0 = vector.load %arg1[%c0, %c0_0] : memref<8x8xf32, #tpu.memory_space<vmem>>, vector<8x8xf32>
    %c0_1 = arith.constant 0 : index
    %c0_2 = arith.constant 0 : index
    %1 = vector.load %arg2[%c0_1, %c0_2] : memref<8x1xf32, #tpu.memory_space<vmem>>, vector<8x1xf32>
    %cst = arith.constant 1.000000e+00 : f32
    %2 = vector.broadcast %cst : f32 to vector<8x1xf32>
    %3 = arith.subf %2, %1 : vector<8x1xf32>
    %4 = vector.broadcast %3 : vector<8x1xf32> to vector<8x8xf32>
    %5 = arith.mulf %0, %4 : vector<8x8xf32>
    %c0_3 = arith.constant 0 : index
    %c0_4 = arith.constant 0 : index
    %6 = vector.load %arg3[%c0_3, %c0_4] : memref<8x128xf32, #tpu.memory_space<vmem>>, vector<8x128xf32>
    %cst_5 = arith.constant dense<0.000000e+00> : vector<8x128xf32>
    %7 = tpu.matmul %5, %6, %cst_5 {dimension_numbers = #tpu.dot_dimension_numbers<[1], [0], [0], [1], [0, 0, 1, 1], [], []>} : vector<8x8xf32>, vector<8x128xf32>, vector<8x128xf32> -> vector<8x128xf32>
    %8 = vector.extract_strided_slice %0 {offsets = [0, 0], sizes = [8, 1], strides = [1, 1]} : vector<8x8xf32> to vector<8x1xf32>
    %9 = arith.fptosi %8 : vector<8x1xf32> to vector<8x1xi32>
    %10 = vector.extract_strided_slice %0 {offsets = [0, 6], sizes = [8, 1], strides = [1, 1]} : vector<8x8xf32> to vector<8x1xf32>
    %11 = arith.fptosi %10 : vector<8x1xf32> to vector<8x1xi32>
    %c289_i32 = arith.constant 289 : i32
    %12 = vector.broadcast %c289_i32 : i32 to vector<8x1xi32>
    %13 = arith.addi %11, %12 : vector<8x1xi32>
    %14 = vector.extract_strided_slice %0 {offsets = [0, 7], sizes = [8, 1], strides = [1, 1]} : vector<8x8xf32> to vector<8x1xf32>
    %15 = arith.fptosi %14 : vector<8x1xf32> to vector<8x1xi32>
    %c546_i32 = arith.constant 546 : i32
    %16 = vector.broadcast %c546_i32 : i32 to vector<8x1xi32>
    %17 = arith.addi %15, %16 : vector<8x1xi32>
    %cst_6 = arith.constant 5.000000e-01 : f32
    %18 = vector.broadcast %cst_6 : f32 to vector<8x1xf32>
    %19 = arith.cmpf ogt, %1, %18 : vector<8x1xf32>
    %c288_i32 = arith.constant 288 : i32
    %20 = vector.broadcast %c288_i32 : i32 to vector<8x1xi32>
    %21 = arith.select %19, %20, %9 : vector<8x1xi1>, vector<8x1xi32>
    %c545_i32 = arith.constant 545 : i32
    %22 = vector.broadcast %c545_i32 : i32 to vector<8x1xi32>
    %23 = arith.select %19, %22, %13 : vector<8x1xi1>, vector<8x1xi32>
    %c802_i32 = arith.constant 802 : i32
    %24 = vector.broadcast %c802_i32 : i32 to vector<8x1xi32>
    %25 = arith.select %19, %24, %17 : vector<8x1xi1>, vector<8x1xi32>
    %26 = tpu.iota {dimensions = array<i32: 1>} : vector<8x896xi32>
    %27 = vector.broadcast %21 : vector<8x1xi32> to vector<8x896xi32>
    %28 = arith.cmpi eq, %26, %27 : vector<8x896xi32>
    %29 = vector.broadcast %23 : vector<8x1xi32> to vector<8x896xi32>
    %30 = arith.cmpi eq, %26, %29 : vector<8x896xi32>
    %31 = arith.ori %28, %30 : vector<8x896xi1>
    %32 = vector.broadcast %25 : vector<8x1xi32> to vector<8x896xi32>
    %33 = arith.cmpi eq, %26, %32 : vector<8x896xi32>
    %34 = arith.ori %31, %33 : vector<8x896xi1>
    %35 = arith.extui %34 : vector<8x896xi1> to vector<8x896xi32>
    %36 = arith.sitofp %35 : vector<8x896xi32> to vector<8x896xf32>
    %37 = arith.truncf %36 : vector<8x896xf32> to vector<8x896xbf16>
    %c0_7 = arith.constant 0 : index
    %c0_8 = arith.constant 0 : index
    %38 = vector.load %arg4[%c0_7, %c0_8] : memref<896x128xbf16, #tpu.memory_space<vmem>>, vector<896x128xbf16>
    %cst_9 = arith.constant dense<0.000000e+00> : vector<8x128xf32>
    %39 = tpu.matmul %37, %38, %cst_9 {dimension_numbers = #tpu.dot_dimension_numbers<[1], [0], [0], [1], [0, 0, 1, 1], [], []>} : vector<8x896xbf16>, vector<896x128xbf16>, vector<8x128xf32> -> vector<8x128xf32>
    %c0_10 = arith.constant 0 : index
    %c0_11 = arith.constant 0 : index
    %40 = vector.load %arg5[%c0_10, %c0_11] : memref<896x128xbf16, #tpu.memory_space<vmem>>, vector<896x128xbf16>
    %cst_12 = arith.constant dense<0.000000e+00> : vector<8x128xf32>
    %41 = tpu.matmul %37, %40, %cst_12 {dimension_numbers = #tpu.dot_dimension_numbers<[1], [0], [0], [1], [0, 0, 1, 1], [], []>} : vector<8x896xbf16>, vector<896x128xbf16>, vector<8x128xf32> -> vector<8x128xf32>
    %42 = arith.addf %39, %41 : vector<8x128xf32>
    %c0_13 = arith.constant 0 : index
    %c0_14 = arith.constant 0 : index
    %43 = vector.load %arg6[%c0_13, %c0_14] : memref<1x128xf32, #tpu.memory_space<vmem>>, vector<1x128xf32>
    %44 = vector.broadcast %43 : vector<1x128xf32> to vector<8x128xf32>
    %45 = arith.addf %42, %44 : vector<8x128xf32>
    %cst_15 = arith.constant 0.000000e+00 : f32
    %46 = vector.broadcast %cst_15 : f32 to vector<8x128xf32>
    %47 = arith.maximumf %45, %46 : vector<8x128xf32>
    %c0_16 = arith.constant 0 : index
    %c0_17 = arith.constant 0 : index
    %48 = vector.load %arg7[%c0_16, %c0_17] : memref<128x128xf32, #tpu.memory_space<vmem>>, vector<128x128xf32>
    %cst_18 = arith.constant dense<0.000000e+00> : vector<8x128xf32>
    %49 = tpu.matmul %47, %48, %cst_18 {dimension_numbers = #tpu.dot_dimension_numbers<[1], [0], [0], [1], [0, 0, 1, 1], [], []>} : vector<8x128xf32>, vector<128x128xf32>, vector<8x128xf32> -> vector<8x128xf32>
    %50 = arith.addf %7, %49 : vector<8x128xf32>
    %c0_19 = arith.constant 0 : index
    %c0_20 = arith.constant 0 : index
    %51 = vector.load %arg8[%c0_19, %c0_20] : memref<1x128xf32, #tpu.memory_space<vmem>>, vector<1x128xf32>
    %52 = vector.broadcast %51 : vector<1x128xf32> to vector<8x128xf32>
    %53 = arith.addf %50, %52 : vector<8x128xf32>
    %c0_21 = arith.constant 0 : index
    %c0_22 = arith.constant 0 : index
    %54 = vector.load %arg9[%c0_21, %c0_22] : memref<8x128xf32, #tpu.memory_space<vmem>>, vector<8x128xf32>
    tpu.vector_store %arg9[%c0_21, %c0_22], %53 {strides = array<i32>} : memref<8x128xf32, #tpu.memory_space<vmem>>, vector<8x128xf32>,
    return
  }
  func.func @transform_0(%arg0: i32) -> (i32, i32) {
    %c0_i32 = arith.constant 0 : i32
    %c0_i32_0 = arith.constant 0 : i32
    return %arg0, %c0_i32 : i32, i32
  }
  func.func @transform_1(%arg0: i32) -> (i32, i32) {
    %c0_i32 = arith.constant 0 : i32
    %c0_i32_0 = arith.constant 0 : i32
    return %arg0, %c0_i32 : i32, i32
  }
  func.func @transform_2(%arg0: i32) -> (i32, i32) {
    %c0_i32 = arith.constant 0 : i32
    %c0_i32_0 = arith.constant 0 : i32
    %c0_i32_1 = arith.constant 0 : i32
    return %c0_i32, %c0_i32_0 : i32, i32
  }
  func.func @transform_3(%arg0: i32) -> (i32, i32) {
    %c0_i32 = arith.constant 0 : i32
    %c0_i32_0 = arith.constant 0 : i32
    %c0_i32_1 = arith.constant 0 : i32
    return %c0_i32, %c0_i32_0 : i32, i32
  }
  func.func @transform_4(%arg0: i32) -> (i32, i32) {
    %c0_i32 = arith.constant 0 : i32
    %c0_i32_0 = arith.constant 0 : i32
    %c0_i32_1 = arith.constant 0 : i32
    return %c0_i32, %c0_i32_0 : i32, i32
  }
  func.func @transform_5(%arg0: i32) -> (i32, i32) {
    %c0_i32 = arith.constant 0 : i32
    %c0_i32_0 = arith.constant 0 : i32
    %c0_i32_1 = arith.constant 0 : i32
    return %c0_i32, %c0_i32_0 : i32, i32
  }
  func.func @transform_6(%arg0: i32) -> (i32, i32) {
    %c0_i32 = arith.constant 0 : i32
    %c0_i32_0 = arith.constant 0 : i32
    %c0_i32_1 = arith.constant 0 : i32
    return %c0_i32, %c0_i32_0 : i32, i32
  }
  func.func @transform_7(%arg0: i32) -> (i32, i32) {
    %c0_i32 = arith.constant 0 : i32
    %c0_i32_0 = arith.constant 0 : i32
    %c0_i32_1 = arith.constant 0 : i32
    return %c0_i32, %c0_i32_0 : i32, i32
  }
  func.func @transform_8(%arg0: i32) -> (i32, i32) {
    %c0_i32 = arith.constant 0 : i32
    %c0_i32_0 = arith.constant 0 : i32
    return %arg0, %c0_i32 : i32, i32
  }
}

</mosaic_0001>

<bundles_post_ra>
// kernel: tpu_custom_call.1
= control target key start
LH: loop header
LB: loop body
LE: loop exit
PB: predicated region body
PF: predicated region fallthrough
CT: control target
= control target key end

     0   :  { %s2960_s0 = inlined_call_operand.vmem [shape: f32[16,8], index: 0, kind: input, shape index: {}]   ;;  %s2961_s1 = inlined_call_operand.vmem [shape: f32[16,1], index: 1, kind: input, shape index: {}]   ;;  %s2962_s2 = inlined_call_operand.vmem [shape: f32[8,128], index: 2, kind: input, shape index: {}]   ;;  %s2963_s3 = inlined_call_operand.hbm [shape: bf16[896,128], index: 3, kind: input, shape index: {}]   ;;  %s2964_s4 = inlined_call_operand.hbm [shape: bf16[896,128], index: 4, kind: input, shape index: {}]   ;;  %s2965_s5 = inlined_call_operand.vmem [shape: f32[1,128], index: 5, kind: input, shape index: {}]   ;;  %s2966_s6 = inlined_call_operand.hbm [shape: f32[128,128], index: 6, kind: input, shape index: {}]   ;;  %s2967_s7 = inlined_call_operand.vmem [shape: f32[1,128], index: 7, kind: input, shape index: {}]   ;;  %s2968_s8 = inlined_call_operand.hbm [shape: f32[16,128], index: 8, kind: output, shape index: {}]  }
   0x1   :  { %2971 = sst [smem:[#allocation13_spill]] %s2963_s3 }
   0x2   :  { %2972 = sst [smem:[#allocation14_spill]] %s2964_s4 }
   0x3   :  { %13 = vsyncpa [#allocation3], 0 }
   0x4   :  { %14 = vsyncpa [#allocation6], 0 }
   0x5   :  { %15 = vsyncpa [#allocation4], 0 }
   0x6   :  { %17 = vsyncpa [#allocation4 + $0x1], 0  ;;  %s2649_s27 = smov 0   ;;  %s2651_s28 = smov 0  }
   0x7   :  { %s2653_s29 = smov 0   ;;  %s2655_s30 = smov 0  }
   0x8 LB: > { %s2670_s9 = sadd.s32 4294967295, %s2591_s30   ;;  %s1730_s10 = sadd.s32 4294967294, %s2591_s30   ;;  %s2591_s30 = sphi %s2655_s30, %s3000_s30   ;;  %s2587_s29 = sphi %s2653_s29, %s2999_s29   ;;  %s2583_s28 = sphi %s2651_s28, %s2998_s28   ;;  %s2579_s27 = sphi %s2649_s27, %s2997_s27  }
   0x9   : > { %s2674_s11 = sadd.s32 1, %s2591_s30   ;;  %s208_s12 = sadd.s32 1, %s2587_s29 }
   0xa   : > { %s205_s13 = ssub.s32 %s2591_s30, %s2674_s11  ;;  %p218_p0 = scmp.ne.s32.totalorder %s2587_s29, %s2583_s28 }
   0xb   : > { %p206_p1 = scmp.eq.s32.totalorder %s205_s13, 0  ;;  %p219_p2 = scmp.eq.s32.totalorder %s2670_s9, 1 }
   0xc   : > { %p224_p3 = scmp.ne.s32.totalorder %s2583_s28, %s2579_s27  ;;  %p225_p4 = scmp.eq.s32.totalorder %s1730_s10, 1 }
   0xd   : > { %s2685_s14 = scalar_select %p206_p1, %s2587_s29, %s208_s12  }
   0xe   : > { %p2687_p5 = por %p219_p2, %p218_p0  ;;  %p2691_p6 = por %p225_p4, %p224_p3 }
   0xf   : > { %2973 = sst [smem:[#allocation12_spill]] %s2685_s14  ;;  %p1731_p7 = scmp.ge.s32.totalorder %s2591_s30, 1 }
  0x10   : > { %p232_p8 = scmp.lt.s32.totalorder %s2591_s30, 3  ;;  %p2376_p9 = scmp.eq.s32.totalorder %s2670_s9, 0 }
  0x11   : > { %s2977_s4 = sld [smem:[#allocation14_spill]]  ;;  %s2593_s25 = smov [#allocation5]  }
  0x12   : > { %p2698_p10 = pnand %p1731_p7, %p232_p8  ;;  %s2978_s3 = sld [smem:[#allocation13_spill]] }
  0x13   : > { %s262_s26 = sshll.u32 %s2593_s25, 4  ;;  %s2594_s10 = smov 64   ;;  %s263_s26 = int_to_ptr.vmem [resolvable:$true] %s262_s26 }
  0x14   : > { %p2362_p11 = pneg %p2698_p10  ;;  %s2595_s12 = smov 4  }
  0x15   : > { %s2596_s13 = smov [#allocation2]   ;;  %s277_s22 = sshll.u32 %s2966_s6, 4  ;;  %s278_s22 = int_to_ptr.hbm [resolvable:$true] %s277_s22 }
  0x16   : > { %p2712_p12 = pnand %p2376_p9, %p2362_p11  ;;  %s248_s18 = sshll.u32 %s2596_s13, 4  ;;  %s249_s18 = int_to_ptr.vmem [resolvable:$true] %s248_s18 }
  0x17   : > { %s260_s20 = sshll.u32 %s2977_s4, 4  ;;  %s2598_s25 = smov 128   ;;  %s261_s20 = int_to_ptr.hbm [resolvable:$true] %s260_s20 }
  0x18   : > { %s246_s23 = sshll.u32 %s2978_s3, 4  ;;  %s2597_s3 = smov [#allocation7]   ;;  %s247_s23 = int_to_ptr.hbm [resolvable:$true] %s246_s23 }
  0x19   : > { %2368 = dma.hbm_to_vmem [thread:$0]  (!%p2712_p12), %s261_s20, 7168, %s263_s26, [#allocation6], %s2594_s10, %s2594_s10, %s2595_s12  }
  0x1a   : > { %2365 = dma.hbm_to_vmem [thread:$0]  (!%p2712_p12), %s247_s23, 7168, %s249_s18, [#allocation3], %s2594_s10, %s2594_s10, %s2595_s12  }
  0x1b   : > { %s279_s4 = sshll.u32 %s2597_s3, 4  ;;  %s2599_s14 = smov 8   ;;  %s280_s4 = int_to_ptr.vmem [resolvable:$true] %s279_s4 }
  0x1c   : > { %2371 = dma.hbm_to_vmem [thread:$0]  (!%p2712_p12), %s278_s22, 2048, %s280_s4, [#allocation6], %s2598_s25, %s2598_s25, %s2599_s14  }
  0x1d   : > { %312 = sbr.rel (%p2698_p10) target bundleno = 624 (0x270), region = 52 }
  0x22   : > { %2566 = dma.done.wait (%p2376_p9), [#allocation3], 7168  }
  0x23   : > { %2568 = vsyncadd (%p2376_p9), [#allocation3], 4294960128 }
  0x24   : > { %2570 = dma.done.wait (%p2376_p9), [#allocation6], 9216  }
  0x25   : > { %2572 = vsyncadd (%p2376_p9), [#allocation6], 4294958080  ;;  %p360_p13 = scmp.lt.s32.totalorder %s2670_s9, 1  ;;  %v2600_v0 = vmov 0   ;;  %s2601_s10 = smov 122   ;;  %v2294_v10 = vld [vmem:[#allocation5 + $0x38] sm:$0xff] }
  0x26   : > { %2426 = vset.pattern.permute.xlu1 %v2600_v0  ;;  %2427 = vset.pattern.permute.xlu2 %v2600_v0  ;;  %s2602_s12 = smov 121   ;;  %v2302_v11 = vld [vmem:[#allocation5 + $0x78] sm:$0xff]  ;;  %v2293_v14 = vld [vmem:[#allocation5 + $0x30] sm:$0xff]  ;;  %v2292_v18 = vld [vmem:[#allocation5 + $0x28] sm:$0xff]  ;;  %s357_s22 = sand.u32 1, %s2583_s28  }
  0x27   : > { %s361_s3 = scalar_select %p360_p13, %s2670_s9, 1  ;;  %2428 = vset.pattern.permute.xlu0 %v2600_v0  ;;  %v2310_v12 = vld [vmem:[#allocation5 + $0xb8] sm:$0xff]  ;;  %1022 = vmatpush.bf16.msra.mxu0 %v2294_v10  ;;  %v2301_v15 = vld [vmem:[#allocation5 + $0x70] sm:$0xff]  ;;  %v2300_v19 = vld [vmem:[#allocation5 + $0x68] sm:$0xff] }
  0x28   : > { %v2318_v13 = vld [vmem:[#allocation5 + $0xf8] sm:$0xff]  ;;  %1035 = vmatpush.bf16.msra.mxu1 %v2302_v11  ;;  %1048 = vmatpush.bf16.msra.mxu2 %v2310_v12  ;;  %v2309_v16 = vld [vmem:[#allocation5 + $0xb0] sm:$0xff]  ;;  %v2308_v20 = vld [vmem:[#allocation5 + $0xa8] sm:$0xff]  ;;  %s1740_s25 = sshll.u32 %s357_s22, 3  ;;  %s2541_s21 = scalar_lea.hbm %s2968_s8, 16 }
  0x29   : > { %s1741_s4 = sshll.u32 %s361_s3, 3  ;;  %1061 = vmatpush.bf16.msra.mxu3 %v2318_v13  ;;  %v2317_v17 = vld [vmem:[#allocation5 + $0xf0] sm:$0xff]  ;;  %v2316_v21 = vld [vmem:[#allocation5 + $0xe8] sm:$0xff]  ;;  %v2291_v22 = vld [vmem:[#allocation5 + $0x20] sm:$0xff]  ;;  %s2228_s3 = sshll.u32 %s2670_s9, 3 }
  0x2a   : > { %s363_s20 = scalar_lea.vmem %s2960_s0, %s1741_s4  ;;  %s367_s26 = scalar_lea.vmem %s2961_s1, %s1741_s4  ;;  %v2299_v23 = vld [vmem:[#allocation5 + $0x60] sm:$0xff]  ;;  %v2290_v27 = vld [vmem:[#allocation5 + $0x18] sm:$0xff]  ;;  %v2289_v32 = vld [vmem:[#allocation5 + $0x10] sm:$0xff] }
  0x2b   : > { %v2743_v1 = vld [vmem:[%s363_s20] sm:$0xff]  ;;  %1023 = vmatpush.bf16.msra.mxu0 %v2293_v14  ;;  %v2298_v28 = vld [vmem:[#allocation5 + $0x58] sm:$0xff]  ;;  %v2297_v33 = vld [vmem:[#allocation5 + $0x50] sm:$0xff]  ;;  %s1623_s17 = scalar_lea.hbm %s2968_s8, %s2228_s3  ;;  %s359_s24 = scalar_lea.vmem [#allocation8], %s1740_s25 }
  0x2c   : > { %v2745_v2 = vld [vmem:[%s367_s26] sm:$0xff]  ;;  %vm2343_vm0 = vcmp.lt.s32.totalorder %v2743_v1, 0  ;;  %v2344_v3 = vceil.f32 %v2743_v1  ;;  %v2345_v4 = vfloor.f32 %v2743_v1  ;;  %1036 = vmatpush.bf16.msra.mxu1 %v2301_v15  ;;  %1049 = vmatpush.bf16.msra.mxu2 %v2309_v16  ;;  %v2306_v30 = vld [vmem:[#allocation5 + $0x98] sm:$0xff]  ;;  %v2305_v34 = vld [vmem:[#allocation5 + $0x90] sm:$0xff]  ;;  %s1625_s26 = sshll.u32 %s359_s24, 4  ;;  %s1613_s9 = scalar_lea.sflag [#allocation4], %s357_s22  ;;  %s1626_s26 = int_to_ptr.vmem [resolvable:$true] %s1625_s26 }
  0x2d   : > { %vm381_vm1 = vcmp.gt.f32.partialorder %v2745_v2, 0.5  ;;  %1062 = vmatpush.bf16.msra.mxu3 %v2317_v17  ;;  %v2307_v24 = vld [vmem:[#allocation5 + $0xa0] sm:$0xff]  ;;  %v2314_v31 = vld [vmem:[#allocation5 + $0xd8] sm:$0xff]  ;;  %v2313_v35 = vld [vmem:[#allocation5 + $0xd0] sm:$0xff]  ;;  %v370_v46 = vsub.f32 1.0, %v2745_v2  ;;  %v389_v17 = vlaneseq }
  0x2e   : > { %v2346_v5 = vsel %vm2343_vm0, %v2344_v3, %v2345_v4  ;;  %v2315_v25 = vld [vmem:[#allocation5 + $0xe0] sm:$0xff]  ;;  %v2288_v37 = vld [vmem:[#allocation5 + $0x8] sm:$0xff]  ;;  %v2326_v47 = vld [vmem:[#allocation5 + $0x138] sm:$0xff] }
  0x2f   : > { %v2347_v6 = vcvt.f32.s32 %v2346_v5  ;;  %1024 = vmatpush.bf16.msra.mxu0 %v2292_v18  ;;  %v2296_v38 = vld [vmem:[#allocation5 + $0x48] sm:$0xff]  ;;  %v2287_v42 = vld [vmem:[#allocation5] sm:$0xff]  ;;  %v2334_v48 = vld [vmem:[#allocation5 + $0x178] sm:$0xff]  ;;  %v390_v18 = vand.u32 127, %v389_v17 }
  0x30   : > { %1037 = vmatpush.bf16.msra.mxu1 %v2300_v19  ;;  %1050 = vmatpush.bf16.msra.mxu2 %v2308_v20  ;;  %v2304_v40 = vld [vmem:[#allocation5 + $0x88] sm:$0xff]  ;;  %v2295_v43 = vld [vmem:[#allocation5 + $0x40] sm:$0xff]  ;;  %v2342_v49 = vld [vmem:[#allocation5 + $0x1b8] sm:$0xff] }
  0x31   : > { %v379_v7 = vadd.s32 289, %v2347_v6  ;;  %v382_v8 = vsel %vm381_vm1, 288, %v2347_v6  ;;  %v380_v9 = vadd.s32 546, %v2347_v6  ;;  %1063 = vmatpush.bf16.msra.mxu3 %v2316_v21  ;;  %v2312_v41 = vld [vmem:[#allocation5 + $0xc8] sm:$0xff]  ;;  %v2303_v44 = vld [vmem:[#allocation5 + $0x80] sm:$0xff]  ;;  %v2238_v50 = vld [vmem:[#allocation2 + $0x38] sm:$0xff] }
  0x32   : > { %398 = vperm.xlu1 %2426, %v382_v8   ;;  %v2311_v45 = vld [vmem:[#allocation5 + $0xc0] sm:$0xff]  ;;  %v2325_v51 = vld [vmem:[#allocation5 + $0x130] sm:$0xff]  ;;  %v2324_v55 = vld [vmem:[#allocation5 + $0x128] sm:$0xff]  ;;  %v391_v21 = vadd.s32 128, %v390_v18 }
  0x33   : > { %383 = vrot.lane.b32.xlu0 %v379_v7, %s2601_s10  ;;  %1025 = vmatpush.bf16.msra.mxu0 %v2291_v22  ;;  %v2333_v52 = vld [vmem:[#allocation5 + $0x170] sm:$0xff]  ;;  %v2332_v56 = vld [vmem:[#allocation5 + $0x168] sm:$0xff]  ;;  %v2323_v59 = vld [vmem:[#allocation5 + $0x120] sm:$0xff]  ;;  %s1627_s10 = sshll.u32 %s1623_s17, 4  ;;  %s1628_s10 = int_to_ptr.hbm [resolvable:$true] %s1627_s10 }
  0x34   : > { %1038 = vmatpush.bf16.msra.mxu1 %v2299_v23  ;;  %1051 = vmatpush.bf16.msra.mxu2 %v2307_v24  ;;  %v2341_v53 = vld [vmem:[#allocation5 + $0x1b0] sm:$0xff]  ;;  %v2340_v57 = vld [vmem:[#allocation5 + $0x1a8] sm:$0xff]  ;;  %v2331_v60 = vld [vmem:[#allocation5 + $0x160] sm:$0xff]  ;;  %v392_v24 = vadd.s32 256, %v390_v18 }
  0x35   : > { %1064 = vmatpush.bf16.msra.mxu3 %v2315_v25  ;;  %v2237_v54 = vld [vmem:[#allocation2 + $0x30] sm:$0xff]  ;;  %v2236_v58 = vld [vmem:[#allocation2 + $0x28] sm:$0xff]  ;;  %v2339_v61 = vld [vmem:[#allocation5 + $0x1a0] sm:$0xff]  ;;  %v2603_v25 = vmov 1.0|1.0  }
  0x36   : > { %v2235_v62 = vld [vmem:[#allocation2 + $0x20] sm:$0xff]  ;;  %v2322_v63 = vld [vmem:[#allocation5 + $0x118] sm:$0xff]  ;;  %v2321_v4 = vld [vmem:[#allocation5 + $0x110] sm:$0xff] }
  0x37   : > { %1026 = vmatpush.bf16.msra.mxu0 %v2290_v27  ;;  %v2330_v0 = vld [vmem:[#allocation5 + $0x158] sm:$0xff]  ;;  %v2329_v5 = vld [vmem:[#allocation5 + $0x150] sm:$0xff]  ;;  %v2320_v8 = vld [vmem:[#allocation5 + $0x108] sm:$0xff] }
  0x38   : > { %1039 = vmatpush.bf16.msra.mxu1 %v2298_v28  ;;  %1052 = vmatpush.bf16.msra.mxu2 %v2306_v30  ;;  %v2338_v2 = vld [vmem:[#allocation5 + $0x198] sm:$0xff]  ;;  %v2337_v6 = vld [vmem:[#allocation5 + $0x190] sm:$0xff]  ;;  %v2336_v10 = vld [vmem:[#allocation5 + $0x188] sm:$0xff]  ;;  %v393_v28 = vadd.s32 384, %v390_v18 }
  0x39   : > { %1065 = vmatpush.bf16.msra.mxu3 %v2314_v31  ;;  %v2234_v3 = vld [vmem:[#allocation2 + $0x18] sm:$0xff]  ;;  %v2233_v7 = vld [vmem:[#allocation2 + $0x10] sm:$0xff]  ;;  %v2232_v11 = vld [vmem:[#allocation2 + $0x8] sm:$0xff] }
  0x3a   : > { %v2319_v12 = vld [vmem:[#allocation5 + $0x100] sm:$0xff]  ;;  %v2246_v22 = vld [vmem:[#allocation2 + $0x78] sm:$0xff]  ;;  %v2272_v17 = vld [vmem:[#allocation2 + $0x148] sm:$0xff] }
  0x3b   : > { %386 = vrot.lane.b32.xlu0 %v380_v9, %s2602_s12  ;;  %1027 = vmatpush.bf16.msra.mxu0 %v2289_v32  ;;  %v2328_v9 = vld [vmem:[#allocation5 + $0x148] sm:$0xff]  ;;  %v2327_v13 = vld [vmem:[#allocation5 + $0x140] sm:$0xff]  ;;  %v2262_v30 = vld [vmem:[#allocation2 + $0xf8] sm:$0xff]  ;;  %s2535_s12 = sshra.s32 %s1628_s10, 4  ;;  %s2536_s12 = int_to_ptr.hbm [resolvable:$true] %s2535_s12 }
  0x3c   : > { %1040 = vmatpush.bf16.msra.mxu1 %v2297_v33  ;;  %1053 = vmatpush.bf16.msra.mxu2 %v2305_v34  ;;  %v2335_v14 = vld [vmem:[#allocation5 + $0x180] sm:$0xff]  ;;  %v2253_v32 = vld [vmem:[#allocation2 + $0xb0] sm:$0xff]  ;;  %v394_v33 = vadd.s32 512, %v390_v18  ;;  %v2244_v34 = vld [vmem:[#allocation2 + $0x68] sm:$0xff]  ;;  %s2537_s13 = scalar_lea.hbm %s2536_s12, 8  ;;  %p2542_p3 = scmp.lt.s32.totalorder %s2536_s12, %s2968_s8 }
  0x3d   : > { %1066 = vmatpush.bf16.msra.mxu3 %v2313_v35  ;;  %v2231_v15 = vld [vmem:[#allocation2] sm:$0xff]  ;;  %v2270_v35 = vld [vmem:[#allocation2 + $0x138] sm:$0xff]  ;;  %v1560_v31 = vld [vmem:[#allocation7 + $0x70] sm:$0xff]  ;;  %p2538_p0 = scmp.ne.s32.totalorder %s2536_s12, %s2537_s13  ;;  %p2543_p4 = scmp.lt.s32.totalorder %s2541_s21, %s2537_s13 }
  0x3f   : > { %1028 = vmatpush.bf16.msra.mxu0 %v2288_v37  ;;  %v2261_v37 = vld [vmem:[#allocation2 + $0xf0] sm:$0xff]  ;;  %p2539_p1 = pnand %p2538_p0, %p2687_p5  ;;  %p2544_p7 = por %p2543_p4, %p2542_p3 }
  0x40   : > { %1041 = vmatpush.bf16.msra.mxu1 %v2296_v38  ;;  %1054 = vmatpush.bf16.msra.mxu2 %v2304_v40  ;;  %v395_v38 = vadd.s32 640, %v390_v18  ;;  %v2243_v40 = vld [vmem:[#allocation2 + $0x60] sm:$0xff] }
  0x41   : > { %1067 = vmatpush.bf16.msra.mxu3 %v2312_v41  ;;  %v2269_v41 = vld [vmem:[#allocation2 + $0x130] sm:$0xff]  ;;  %p2540_p2 = pneg %p2539_p1 }
  0x43   : > { %1029 = vmatpush.bf16.msra.mxu0 %v2287_v42  ;;  %v1554_v42 = vld [vmem:[#allocation7 + $0x40] sm:$0xff]  ;;  %p2545_p8 = pnand %p2544_p7, %p2540_p2 }
  0x44   : > { %1042 = vmatpush.bf16.msra.mxu1 %v2295_v43  ;;  %1055 = vmatpush.bf16.msra.mxu2 %v2303_v44  ;;  %v396_v43 = vadd.s32 768, %v390_v18  ;;  %v2260_v44 = vld [vmem:[#allocation2 + $0xe8] sm:$0xff] }
  0x45   : > { %1068 = vmatpush.bf16.msra.mxu3 %v2311_v45  ;;  %v2251_v45 = vld [vmem:[#allocation2 + $0xa0] sm:$0xff] }
  0x47   : > { %1074 = vmatpush.bf16.msrb.mxu0 %v2326_v47  ;;  %v2268_v47 = vld [vmem:[#allocation2 + $0x128] sm:$0xff] }
  0x48   : > { %1087 = vmatpush.bf16.msrb.mxu1 %v2334_v48  ;;  %1100 = vmatpush.bf16.msrb.mxu2 %v2342_v49  ;;  %v2259_v49 = vld [vmem:[#allocation2 + $0xe0] sm:$0xff] }
  0x49   : > { %1449 = vmatpush.bf16.msrb.mxu3 %v2238_v50  ;;  %v2250_v50 = vld [vmem:[#allocation2 + $0x98] sm:$0xff] }
  0x4b   : > { %1075 = vmatpush.bf16.msrb.mxu0 %v2325_v51  ;;  %v2241_v51 = vld [vmem:[#allocation2 + $0x50] sm:$0xff] }
  0x4c   : > { %1088 = vmatpush.bf16.msrb.mxu1 %v2333_v52  ;;  %1101 = vmatpush.bf16.msrb.mxu2 %v2341_v53  ;;  %v2267_v52 = vld [vmem:[#allocation2 + $0x120] sm:$0xff] }
  0x4d   : > { %1450 = vmatpush.bf16.msrb.mxu3 %v2237_v54  ;;  %v2258_v54 = vld [vmem:[#allocation2 + $0xd8] sm:$0xff]  ;;  %v1550_v53 = vld [vmem:[#allocation7 + $0x20] sm:$0xff] }
  0x4f   : > { %1076 = vmatpush.bf16.msrb.mxu0 %v2324_v55  ;;  %v2249_v55 = vld [vmem:[#allocation2 + $0x90] sm:$0xff] }
  0x50   : > { %1089 = vmatpush.bf16.msrb.mxu1 %v2332_v56  ;;  %1102 = vmatpush.bf16.msrb.mxu2 %v2340_v57  ;;  %v2240_v56 = vld [vmem:[#allocation2 + $0x48] sm:$0xff]  ;;  %v2266_v57 = vld [vmem:[#allocation2 + $0x118] sm:$0xff] }
  0x51   : > { %1451 = vmatpush.bf16.msrb.mxu3 %v2236_v58  ;;  %v2257_v58 = vld [vmem:[#allocation2 + $0xd0] sm:$0xff] }
  0x53   : > { %1077 = vmatpush.bf16.msrb.mxu0 %v2323_v59  ;;  %v2248_v59 = vld [vmem:[#allocation2 + $0x88] sm:$0xff] }
  0x54   : > { %1090 = vmatpush.bf16.msrb.mxu1 %v2331_v60  ;;  %1103 = vmatpush.bf16.msrb.mxu2 %v2339_v61  ;;  %v2239_v60 = vld [vmem:[#allocation2 + $0x40] sm:$0xff]  ;;  %v2265_v61 = vld [vmem:[#allocation2 + $0x110] sm:$0xff] }
  0x55   : > { %1452 = vmatpush.bf16.msrb.mxu3 %v2235_v62  ;;  %v2278_v62 = vld [vmem:[#allocation2 + $0x178] sm:$0xff] }
  0x57   : > { %1078 = vmatpush.bf16.msrb.mxu0 %v2322_v63  ;;  %v2256_v63 = vld [vmem:[#allocation2 + $0xc8] sm:$0xff] }
  0x58   : > { %1091 = vmatpush.bf16.msrb.mxu1 %v2330_v0  ;;  %1104 = vmatpush.bf16.msrb.mxu2 %v2338_v2  ;;  %v2247_v0 = vld [vmem:[#allocation2 + $0x80] sm:$0xff]  ;;  %v2286_v2 = vld [vmem:[#allocation2 + $0x1b8] sm:$0xff] }
  0x59   : > { %1453 = vmatpush.bf16.msrb.mxu3 %v2234_v3  ;;  %v2264_v3 = vld [vmem:[#allocation2 + $0x108] sm:$0xff] }
  0x5b   : > { %1079 = vmatpush.bf16.msrb.mxu0 %v2321_v4  ;;  %v2277_v4 = vld [vmem:[#allocation2 + $0x170] sm:$0xff] }
  0x5c   : > { %1092 = vmatpush.bf16.msrb.mxu1 %v2329_v5  ;;  %1105 = vmatpush.bf16.msrb.mxu2 %v2337_v6  ;;  %v2255_v5 = vld [vmem:[#allocation2 + $0xc0] sm:$0xff]  ;;  %v2285_v6 = vld [vmem:[#allocation2 + $0x1b0] sm:$0xff] }
  0x5d   : > { %1454 = vmatpush.bf16.msrb.mxu3 %v2233_v7  ;;  %v2263_v7 = vld [vmem:[#allocation2 + $0x100] sm:$0xff] }
  0x5f   : > { %1080 = vmatpush.bf16.msrb.mxu0 %v2320_v8  ;;  %v2276_v8 = vld [vmem:[#allocation2 + $0x168] sm:$0xff] }
  0x60   : > { %1093 = vmatpush.bf16.msrb.mxu1 %v2328_v9  ;;  %1106 = vmatpush.bf16.msrb.mxu2 %v2336_v10  ;;  %v377_v9 = vld [vmem:[%s2962_s2] sm:$0xff]  ;;  %v2284_v10 = vld [vmem:[#allocation2 + $0x1a8] sm:$0xff] }
  0x61   : > { %1455 = vmatpush.bf16.msrb.mxu3 %v2232_v11  ;;  %v2275_v11 = vld [vmem:[#allocation2 + $0x160] sm:$0xff] }
  0x63   : > { %1081 = vmatpush.bf16.msrb.mxu0 %v2319_v12  ;;  %v2283_v12 = vld [vmem:[#allocation2 + $0x1a0] sm:$0xff] }
  0x64   : > { %1094 = vmatpush.bf16.msrb.mxu1 %v2327_v13  ;;  %1107 = vmatpush.bf16.msrb.mxu2 %v2335_v14  ;;  %v2274_v13 = vld [vmem:[#allocation2 + $0x158] sm:$0xff] }
  0x65   : > { %1456 = vmatpush.bf16.msrb.mxu3 %v2231_v15  ;;  %v2282_v14 = vld [vmem:[#allocation2 + $0x198] sm:$0xff]  ;;  %v2273_v15 = vld [vmem:[#allocation2 + $0x150] sm:$0xff] }
  0xa4   : > { %v2758_v16 = vpop.permute.xlu1 %398 }
  0xa5   : > { %v384_v26 = vpop.permute.xlu0 %383  ;;  %vm400_vm3 = vcmp.eq.s32.totalorder %v390_v18, %v2758_v16  ;;  %vm401_vm10 = vcmp.eq.s32.totalorder %v391_v21, %v2758_v16  ;;  %vm402_vm0 = vcmp.eq.s32.totalorder %v392_v24, %v2758_v16 }
  0xa6   : > { %v385_v29 = vsel %vm381_vm1, 545, %v384_v26  ;;  %v2254_v26 = vld [vmem:[#allocation2 + $0xb8] sm:$0xff] }
  0xa7   : > { %408 = vperm.xlu1 %2426, %v385_v29   ;;  %v2245_v29 = vld [vmem:[#allocation2 + $0x70] sm:$0xff] }
  0xad   : > { %v387_v36 = vpop.permute.xlu0 %386 }
  0xae   : > { %v388_v39 = vsel %vm381_vm1, 802, %v387_v36 }
  0xaf   : > { %425 = vperm.xlu2 %2427, %v388_v39   ;;  %v2252_v39 = vld [vmem:[#allocation2 + $0xa8] sm:$0xff] }
  0xb7   : > { %373 = vperm.xlu2 %2427, %v370_v46   ;;  %v2242_v46 = vld [vmem:[#allocation2 + $0x58] sm:$0xff] }
 0x109   : > { %v2760_v19 = vpop.permute.xlu2 %425 }
 0x10a   : > { %vm427_vm2 = vcmp.eq.s32.totalorder %v390_v18, %v2760_v19  ;;  %vm428_vm8 = vcmp.eq.s32.totalorder %v391_v21, %v2760_v19  ;;  %vm429_vm14 = vcmp.eq.s32.totalorder %v392_v24, %v2760_v19 }
 0x119   : > { %v2762_v20 = vpop.permute.xlu1 %408 }
 0x11a   : > { %vm410_vm4 = vcmp.eq.s32.totalorder %v390_v18, %v2762_v20  ;;  %vm411_vm6 = vcmp.eq.s32.totalorder %v391_v21, %v2762_v20  ;;  %vm412_vm12 = vcmp.eq.s32.totalorder %v392_v24, %v2762_v20  ;;  %v374_v18 = vpop.permute.xlu2 %373  ;;  %v2271_v21 = vld [vmem:[#allocation2 + $0x140] sm:$0xff] }
 0x11b   : > { %vm417_vm5 = vmor %vm400_vm3, %vm410_vm4  ;;  %vm430_vm4 = vcmp.eq.s32.totalorder %v393_v28, %v2760_v19 }
 0x11c   : > { %vm2768_vm7 = vmor %vm417_vm5, %vm427_vm2  ;;  %vm413_vm2 = vcmp.eq.s32.totalorder %v393_v28, %v2762_v20 }
 0x11d   : > { %vm1974_vm9 = vmpackc.low %vm2768_vm7, %vm2768_vm7 }
 0x11e   : > { %1975 = vmatmul.msk.bf16.vlgmr.msra.gmra.mxu0 %vm1974_vm9, %v2603_v25  ;;  %vm418_vm11 = vmor %vm401_vm10, %vm411_vm6  ;;  %vm403_vm6 = vcmp.eq.s32.totalorder %v393_v28, %v2758_v16  ;;  %vm414_vm10 = vcmp.eq.s32.totalorder %v394_v33, %v2762_v20 }
 0x11f   : > { %vm2784_vm13 = vmor %vm418_vm11, %vm428_vm8  ;;  %1462 = vmatpush.bf16.msra.mxu0 %v2246_v22  ;;  %v2279_v22 = vld [vmem:[#allocation2 + $0x180] sm:$0xff] }
 0x120   : > { %vm1976_vm15 = vmpackc.low %vm2784_vm13, %vm2784_vm13  ;;  %vm1582_vm13 = vcmask 64512  }
 0x121   : > { %1977 = vmatmul.msk.bf16.vlgmr.msra.gmra.mxu1 %vm1976_vm15, %v2603_v25  ;;  %vm419_vm1 = vmor %vm402_vm0, %vm412_vm12  ;;  %vm431_vm12 = vcmp.eq.s32.totalorder %v394_v33, %v2760_v19  ;;  %vm404_vm0 = vcmp.eq.s32.totalorder %v394_v33, %v2758_v16 }
 0x122   : > { %vm2800_vm3 = vmor %vm419_vm1, %vm429_vm14  ;;  %1475 = vmatpush.bf16.msra.mxu1 %v2254_v26 }
 0x123   : > { %vm2970_vm5 = vmpackc.low %vm2800_vm3, %vm2800_vm3  ;;  %1463 = vmatpush.bf16.msra.mxu0 %v2245_v29 }
 0x124   : > { %1979 = vmatmul.msk.bf16.vlgmr.msra.gmra.mxu2 %vm2970_vm5, %v2603_v25  ;;  %vm420_vm8 = vmor %vm403_vm6, %vm413_vm2  ;;  %vm415_vm2 = vcmp.eq.s32.totalorder %v395_v38, %v2762_v20  ;;  %vm405_vm6 = vcmp.eq.s32.totalorder %v395_v38, %v2758_v16 }
 0x125   : > { %vm2816_vm11 = vmor %vm420_vm8, %vm430_vm4  ;;  %1488 = vmatpush.bf16.msra.mxu2 %v2262_v30  ;;  %vm432_vm8 = vcmp.eq.s32.totalorder %v395_v38, %v2760_v19  ;;  %v1561_v30 = vld [vmem:[#allocation7 + $0x78] sm:$0xff]  ;;  %v1556_v38 = vld [vmem:[#allocation7 + $0x50] sm:$0xff] }
 0x126   : > { %vm2969_vm14 = vmpackc.low %vm2816_vm11, %vm2816_vm11  ;;  %1476 = vmatpush.bf16.msra.mxu1 %v2253_v32  ;;  %v1559_v32 = vld [vmem:[#allocation7 + $0x68] sm:$0xff] }
 0x127   : > { %1981 = vmatmul.msk.bf16.vlgmr.msra.gmra.mxu3 %vm2969_vm14, %v2603_v25  ;;  %1464 = vmatpush.bf16.msra.mxu0 %v2244_v34  ;;  %vm421_vm1 = vmor %vm404_vm0, %vm414_vm10  ;;  %vm416_vm10 = vcmp.eq.s32.totalorder %v396_v43, %v2762_v20  ;;  %v376_v20 = vmul.f32 %v374_v18, %v2743_v1 }
 0x128   : > { %1501 = vmatpush.bf16.msra.mxu3 %v2270_v35  ;;  %vm2832_vm4 = vmor %vm421_vm1, %vm431_vm12  ;;  %vm406_vm1 = vcmp.eq.s32.totalorder %v396_v43, %v2758_v16  ;;  %v2281_v16 = vld [vmem:[#allocation2 + $0x190] sm:$0xff]  ;;  %v1558_v35 = vld [vmem:[#allocation7 + $0x60] sm:$0xff] }
 0x129   : > { %1489 = vmatpush.bf16.msra.mxu2 %v2261_v37  ;;  %vm422_vm14 = vmor %vm405_vm6, %vm415_vm2  ;;  %vm433_vm2 = vcmp.eq.s32.totalorder %v396_v43, %v2760_v19  ;;  %v2280_v19 = vld [vmem:[#allocation2 + $0x188] sm:$0xff]  ;;  %v1557_v37 = vld [vmem:[#allocation7 + $0x58] sm:$0xff] }
 0x12a   : > { %1477 = vmatpush.bf16.msra.mxu1 %v2252_v39  ;;  %vm1982_vm12 = vmpackc.low %vm2832_vm4, %vm2832_vm4  ;;  %v1555_v39 = vld [vmem:[#allocation7 + $0x48] sm:$0xff]  ;;  %v1553_v43 = vld [vmem:[#allocation7 + $0x38] sm:$0xff] }
 0x12b   : > { %1465 = vmatpush.bf16.msra.mxu0 %v2243_v40  ;;  %vm2842_vm0 = vmor %vm422_vm14, %vm432_vm8 }
 0x12c   : > { %1502 = vmatpush.bf16.msra.mxu3 %v2269_v41  ;;  %vm423_vm5 = vmor %vm406_vm1, %vm416_vm10 }
 0x12d   : > { %1490 = vmatpush.bf16.msra.mxu2 %v2260_v44  ;;  %vm1984_vm14 = vmpackc.low %vm2842_vm0, %vm2842_vm0 }
 0x12e   : > { %1478 = vmatpush.bf16.msra.mxu1 %v2251_v45  ;;  %1983 = vmatmul.msk.bf16.vlgmr.msrb.gmra.mxu0 %vm1982_vm12, %v2603_v25  ;;  %vm2857_vm6 = vmor %vm423_vm5, %vm433_vm2 }
 0x12f   : > { %1466 = vmatpush.bf16.msra.mxu0 %v2242_v46  ;;  %vm1986_vm8 = vmpackc.low %vm2857_vm6, %vm2857_vm6 }
 0x130   : > { %1503 = vmatpush.bf16.msra.mxu3 %v2268_v47  ;;  %vm2994_vm7 = vmpackc.low %vm2800_vm3, %vm2800_vm3  ;;  %v1552_v47 = vld [vmem:[#allocation7 + $0x30] sm:$0xff] }
 0x131   : > { %1491 = vmatpush.bf16.msra.mxu2 %v2259_v49  ;;  %1985 = vmatmul.msk.bf16.vlgmr.msrb.gmra.mxu1 %vm1984_vm14, %v2603_v25  ;;  %v1551_v49 = vld [vmem:[#allocation7 + $0x28] sm:$0xff] }
 0x132   : > { %1479 = vmatpush.bf16.msra.mxu1 %v2250_v50 }
 0x133   : > { %1467 = vmatpush.bf16.msra.mxu0 %v2241_v51 }
 0x134   : > { %1504 = vmatpush.bf16.msra.mxu3 %v2267_v52  ;;  %1987 = vmatmul.msk.bf16.vlgmr.msrb.gmra.mxu2 %vm1986_vm8, %v2603_v25 }
 0x135   : > { %1492 = vmatpush.bf16.msra.mxu2 %v2258_v54  ;;  %v1549_v54 = vld [vmem:[#allocation7 + $0x18] sm:$0xff] }
 0x136   : > { %1480 = vmatpush.bf16.msra.mxu1 %v2249_v55 }
 0x137   : > { %2213 = vmatmul.msk.bf16.vlgmr.msrb.gmra.mxu3 %vm1974_vm9, %v2603_v25  ;;  %1468 = vmatpush.bf16.msra.mxu0 %v2240_v56  ;;  %vm2995_vm9 = vmpackc.low %vm2816_vm11, %vm2816_vm11 }
 0x138   : > { %1505 = vmatpush.bf16.msra.mxu3 %v2266_v57 }
 0x139   : > { %1493 = vmatpush.bf16.msra.mxu2 %v2257_v58  ;;  %v1548_v58 = vld [vmem:[#allocation7 + $0x10] sm:$0xff] }
 0x13a   : > { %1481 = vmatpush.bf16.msra.mxu1 %v2248_v59  ;;  %v1547_v59 = vld [vmem:[#allocation7 + $0x8] sm:$0xff] }
 0x13b   : > { %1469 = vmatpush.bf16.msra.mxu0 %v2239_v60 }
 0x13c   : > { %1506 = vmatpush.bf16.msra.mxu3 %v2265_v61 }
 0x13d   : > { %1494 = vmatpush.bf16.msra.mxu2 %v2256_v63  ;;  %v1546_v63 = vld [vmem:[#allocation7] sm:$0xff] }
 0x13e   : > { %1482 = vmatpush.bf16.msra.mxu1 %v2247_v0  ;;  %2215 = vmatmul.msk.bf16.vlgmr.msra.gmra.mxu0 %vm1976_vm15, %v2603_v25 }
 0x13f   : > { %1514 = vmatpush.bf16.msrb.mxu0 %v2278_v62 }
 0x140   : > { %1507 = vmatpush.bf16.msra.mxu3 %v2264_v3 }
 0x141   : > { %1495 = vmatpush.bf16.msra.mxu2 %v2255_v5  ;;  %2217 = vmatmul.msk.bf16.vlgmr.msra.gmra.mxu1 %vm2994_vm7, %v2603_v25 }
 0x142   : > { %1527 = vmatpush.bf16.msrb.mxu1 %v2286_v2 }
 0x143   : > { %1515 = vmatpush.bf16.msrb.mxu0 %v2277_v4 }
 0x144   : > { %1508 = vmatpush.bf16.msra.mxu3 %v2263_v7  ;;  %2219 = vmatmul.msk.bf16.vlgmr.msra.gmra.mxu2 %vm2995_vm9, %v2603_v25 }
 0x145   : > { %1562 = vmatpush.msrb.mxu2 %v1561_v30 }
 0x146   : > { %1528 = vmatpush.bf16.msrb.mxu1 %v2285_v6 }
 0x147   : > { %1516 = vmatpush.bf16.msrb.mxu0 %v2276_v8  ;;  %2221 = vmatmul.msk.bf16.vlgmr.msra.gmra.mxu3 %vm1982_vm12, %v2603_v25 }
 0x148   : > { %1601 = vmatpush.msrb.mxu3 %v377_v9  ;;  %1563 = vmatpush.msrb.mxu2 %v1560_v31 }
 0x14a   : > { %1529 = vmatpush.bf16.msrb.mxu1 %v2284_v10  ;;  %1564 = vmatpush.msrb.mxu2 %v1559_v32 }
 0x14b   : > { %1517 = vmatpush.bf16.msrb.mxu0 %v2275_v11 }
 0x14c   : > { %1565 = vmatpush.msrb.mxu2 %v1558_v35 }
 0x14e   : > { %1530 = vmatpush.bf16.msrb.mxu1 %v2283_v12  ;;  %1566 = vmatpush.msrb.mxu2 %v1557_v37  ;;  %v2429_v12 = vld [vmem:[%s2965_s5] ss:$0 sm:$0xff] }
 0x14f   : > { %1518 = vmatpush.bf16.msrb.mxu0 %v2274_v13 }
 0x150   : > { %1567 = vmatpush.msrb.mxu2 %v1556_v38 }
 0x152   : > { %1531 = vmatpush.bf16.msrb.mxu1 %v2282_v14  ;;  %1568 = vmatpush.msrb.mxu2 %v1555_v39 }
 0x153   : > { %1519 = vmatpush.bf16.msrb.mxu0 %v2273_v15 }
 0x154   : > { %1569 = vmatpush.msrb.mxu2 %v1554_v42 }
 0x156   : > { %1532 = vmatpush.bf16.msrb.mxu1 %v2281_v16  ;;  %1570 = vmatpush.msrb.mxu2 %v1553_v43 }
 0x157   : > { %1520 = vmatpush.bf16.msrb.mxu0 %v2272_v17  ;;  %2226 = vmatmul.msk.f32.vlgmr.msrb.gmra.mxu3 %vm1582_vm13, %v376_v20 }
 0x158   : > { %1571 = vmatpush.msrb.mxu2 %v1552_v47 }
 0x15a   : > { %1533 = vmatpush.bf16.msrb.mxu1 %v2280_v19  ;;  %1572 = vmatpush.msrb.mxu2 %v1551_v49  ;;  %v2430_v19 = vld [vmem:[%s2967_s7] ss:$0 sm:$0xff] }
 0x15b   : > { %1521 = vmatpush.bf16.msrb.mxu0 %v2271_v21 }
 0x15c   : > { %1573 = vmatpush.msrb.mxu2 %v1550_v53 }
 0x15e   : > { %1534 = vmatpush.bf16.msrb.mxu1 %v2279_v22  ;;  %2223 = vmatmul.msk.bf16.vlgmr.msrb.gmra.mxu0 %vm1984_vm14, %v2603_v25 }
 0x15f   : > { %1574 = vmatpush.msrb.mxu2 %v1549_v54 }
 0x161   : > { %2225 = vmatmul.msk.bf16.vlgmr.msrb.gmra.mxu1 %vm1986_vm8, %v2603_v25  ;;  %1575 = vmatpush.msrb.mxu2 %v1548_v58 }
 0x163   : > { %1576 = vmatpush.msrb.mxu2 %v1547_v59 }
 0x165   : > { %1577 = vmatpush.msrb.mxu2 %v1546_v63 }
 0x19b   : > { %v1031_v1 = vpop.f32.mrf.mxu0 }
 0x19e   : > { %v1044_v23 = vpop.f32.mrf.mxu1 }
 0x19f   : > { %v1045_v44 = vadd.f32 %v1044_v23, %v1031_v1 }
 0x1a3   : > { %v1033_v24 = vpop.f32.mrf.mxu0 }
 0x1a6   : > { %v1046_v26 = vpop.f32.mrf.mxu1 }
 0x1a7   : > { %v1057_v27 = vpop.f32.mrf.mxu2 }
 0x1a8   : > { %v1058_v48 = vadd.f32 %v1057_v27, %v1045_v44 }
 0x1aa   : > { %v1070_v28 = vpop.f32.mrf.mxu3 }
 0x1ab   : > { %v1083_v29 = vpop.f32.mrf.mxu0  ;;  %v1071_v52 = vadd.f32 %v1070_v28, %v1058_v48 }
 0x1ad   : > { %v1084_v55 = vadd.f32 %v1083_v29, %v1071_v52 }
 0x1ae   : > { %v1096_v33 = vpop.f32.mrf.mxu1 }
 0x1af   : > { %v1059_v34 = vpop.f32.mrf.mxu2  ;;  %v1097_v60 = vadd.f32 %v1096_v33, %v1084_v55 }
 0x1b2   : > { %v1072_v36 = vpop.f32.mrf.mxu3 }
 0x1b3   : > { %v1085_v25 = vpop.f32.mrf.mxu0 }
 0x1b6   : > { %v1098_v40 = vpop.f32.mrf.mxu1 }
 0x1b7   : > { %v1109_v41 = vpop.f32.mrf.mxu2 }
 0x1b8   : > { %v1110_v0 = vadd.f32 %v1109_v41, %v1097_v60 }
 0x1ba   : > { %v1458_v45 = vpop.f32.mrf.mxu3 }
 0x1bb   : > { %v1471_v46 = vpop.f32.mrf.mxu0  ;;  %v1459_v3 = vadd.f32 %v1458_v45, %v1110_v0 }
 0x1bd   : > { %v1472_v4 = vadd.f32 %v1471_v46, %v1459_v3 }
 0x1be   : > { %v1484_v50 = vpop.f32.mrf.mxu1 }
 0x1bf   : > { %v1111_v51 = vpop.f32.mrf.mxu2  ;;  %v1485_v6 = vadd.f32 %v1484_v50, %v1472_v4 }
 0x1c2   : > { %v1460_v56 = vpop.f32.mrf.mxu3 }
 0x1c3   : > { %v1473_v57 = vpop.f32.mrf.mxu0 }
 0x1c6   : > { %v1486_v61 = vpop.f32.mrf.mxu1 }
 0x1c7   : > { %v1497_v62 = vpop.f32.mrf.mxu2 }
 0x1c8   : > { %v1498_v8 = vadd.f32 %v1497_v62, %v1485_v6 }
 0x1ca   : > { %v1510_v2 = vpop.f32.mrf.mxu3 }
 0x1cb   : > { %v1511_v9 = vadd.f32 %v1510_v2, %v1498_v8 }
 0x1cf   : > { %v1499_v5 = vpop.f32.mrf.mxu2 }
 0x1d2   : > { %v1512_v7 = vpop.f32.mrf.mxu3 }
 0x1da   : > { %v1603_v20 = vpop.f32.mrf.mxu3 }
 0x1db   : > { %v1523_v10 = vpop.f32.mrf.mxu0 }
 0x1dc   : > { %v1524_v11 = vadd.f32 %v1523_v10, %v1511_v9 }
 0x1de   : > { %v1536_v13 = vpop.f32.mrf.mxu1 }
 0x1df   : > { %v1537_v14 = vadd.f32 %v1536_v13, %v1524_v11 }
 0x1e1   : > { %v1544_v15 = vadd.f32 %v2429_v12, %v1537_v14 }
 0x1e3   : > { %v1545_v16 = vmax.f32 %v1544_v15, 0.0  ;;  %v1525_v17 = vpop.f32.mrf.mxu0 }
 0x1e5   : > { %1578 = vmatmul.f32.vlgmr.msrb.gmra.mxu2 %v1545_v16 }
 0x1e6   : > { %v1538_v18 = vpop.f32.mrf.mxu1 }
 0x268   : > { %v1579_v21 = vpop.f32.mrf.mxu2 }
 0x269   : > { %v1604_v22 = vadd.f32 %v1603_v20, %v1579_v21 }
 0x26b   : > { %v1610_v1 = vadd.f32 %v2430_v19, %v1604_v22 }
 0x26d   : > { %1611 = vst [vmem:[%s359_s24] sm:$0xff] %v1610_v1 }
 0x26e   : > { %2548 = shalt.err (!%p2545_p8)
}
 0x26f   : > { %2360 = dma.vmem_to_hbm [thread:$0]  (%p2687_p5), %s1626_s26, 128, %s1628_s10, %s1613_s9  }
 0x270 PF: > { %p2382_p9 = scmp.ge.s32.totalorder %s2591_s30, 2  ;;  %s1639_s22 = sand.u32 1, %s2579_s27  }
 0x271   : > { %s1640_s4 = scalar_lea.sflag [#allocation4], %s1639_s22 }
 0x272   : > { %p2373_p10 = pnand %p2382_p9, %p2691_p6 }
 0x274   : > { %p2374_p11 = pneg %p2373_p10 }
 0x276   : > { %2574 = dma.done.wait (%p2374_p11), %s1640_s4, 128  }
 0x277   : > { %2576 = vsyncadd (%p2374_p11), %s1640_s4, 4294967168  ;;  %s2996_s14 = sld [smem:[#allocation12_spill]]  ;;  %p20_p12 = scmp.ge.s32.totalorder %s2674_s11, 4  }
 0x278   : > { %s2997_s27 = smov %s2583_s28  ;;  %s2998_s28 = smov %s2587_s29 }
 0x279   : > { %s3000_s30 = smov %s2674_s11  ;;  %22 = sbr.rel (!%p20_p12) target bundleno = 8 (0x8), region = 103 }
 0x27d   : > { %s2999_s29 = smov %s2996_s14 }
 0x27e   :  { %1646 = vsyncpa [#allocation3], 1 }
 0x27f   :  { %1648 = vsyncpa [#allocation3 + $0x1], 1 }
 0x280   :  { %1649 = vsyncpa [#allocation6], 1 }
 0x281   :  { %1650 = vsyncpa [#allocation4], 1 }
 0x282   :  { %1652 = vsyncpa [#allocation4 + $0x1], 1 }

</bundles_post_ra>
